<compile_context>
chip_gen: v7x
topology: tpu7x:2x2x1
jax: 0.10.0
libtpu: 0.0.40
codegen_flags: <defaults>
</compile_context>

<pallas_src>
import functools

import jax
import jax.numpy as jnp
from jax.experimental import pallas as pl
from jax.experimental.pallas import tpu as pltpu


def fused_convbn_kernel(w_ref, pm_ref, gamma_ref, beta_ref, out_ref, *, eps, count):
    """One MXU contraction + training-mode BatchNorm (centered stats) + ReLU, fully fused.

    Shapes (all VMEM-resident, single grid step):
      w_ref     : (Cout, K)        bf16   (K = KH*KW*Cin)
      pm_ref    : (K, M)           bf16   (M = N*H*W, patch matrix built in the wrapper)
      gamma_ref : (Cout, 1)        f32
      beta_ref  : (Cout, 1)        f32
      out_ref   : (Cout, M)        f32    lane-dense (M multiple of 128)
    """
    # Single MXU contraction, f32 accumulation.
    acc = jnp.dot(w_ref[...], pm_ref[...], preferred_element_type=jnp.float32)  # (Cout, M)

    inv_count = 1.0 / count
    # Centered (two-pass) training-mode BatchNorm statistics on the resident activations.
    mean = jnp.sum(acc, axis=1, keepdims=True) * inv_count          # (Cout, 1)
    d = acc - mean
    var = jnp.sum(d * d, axis=1, keepdims=True) * inv_count         # biased variance
    inv_std = jax.lax.rsqrt(var + eps)

    scale = gamma_ref[...] * inv_std                                 # (Cout, 1)
    shift = beta_ref[...] - mean * scale                             # (Cout, 1)

    out_ref[...] = jnp.maximum(acc * scale + shift, 0.0).astype(out_ref.dtype)


def conv_block_forward(x_nchw, w_oihw, b_conv, gamma, beta, *, padding=1, eps=1e-5):
    N, Cin, H, W = x_nchw.shape
    Cout, _, KH, KW = w_oihw.shape
    # Conv bias is mathematically cancelled by the BatchNorm mean subtraction; fold it away.
    del b_conv

    M = N * H * W
    K = Cin * KH * KW

    # --- wrapper glue: zero pad + im2col patch matrix (cheap XLA slices at these shapes) ---
    xp = jnp.pad(x_nchw, ((0, 0), (0, 0), (padding, padding), (padding, padding)))
    taps = []
    for kh in range(KH):
        for kw in range(KW):
            taps.append(xp[:, :, kh:kh + H, kw:kw + W])              # (N, Cin, H, W)
    pm = jnp.stack(taps, axis=0).reshape(KH, KW, N, Cin, H, W)
    pm = jnp.transpose(pm, (3, 0, 1, 2, 4, 5))                       # (Cin, KH, KW, N, H, W)
    pm = pm.reshape(K, M).astype(jnp.bfloat16)                       # contraction rows: (cin,kh,kw)

    # Weight matches the (cin, kh, kw) contraction ordering with a plain reshape (no transpose).
    w2 = w_oihw.reshape(Cout, K).astype(jnp.bfloat16)                # (Cout, K)

    gamma_c = gamma.reshape(Cout, 1).astype(jnp.float32)
    beta_c = beta.reshape(Cout, 1).astype(jnp.float32)

    kernel = functools.partial(fused_convbn_kernel, eps=eps, count=float(M))
    flops = 2 * Cout * M * K + 6 * Cout * M
    bytes_accessed = pm.size * 2 + w2.size * 2 + Cout * M * 4 + 2 * Cout * 4

    out_flat = pl.pallas_call(
        kernel,
        out_shape=jax.ShapeDtypeStruct((Cout, M), jnp.float32),
        grid=(1,),
        in_specs=[
            pl.BlockSpec((Cout, K), lambda i: (0, 0)),
            pl.BlockSpec((K, M), lambda i: (0, 0)),
            pl.BlockSpec((Cout, 1), lambda i: (0, 0)),
            pl.BlockSpec((Cout, 1), lambda i: (0, 0)),
        ],
        out_specs=pl.BlockSpec((Cout, M), lambda i: (0, 0)),
        compiler_params=pltpu.CompilerParams(dimension_semantics=("arbitrary",)),
        cost_estimate=pl.CostEstimate(flops=flops, transcendentals=0,
                                      bytes_accessed=bytes_accessed),
    )(w2, pm, gamma_c, beta_c)

    # (Cout, N*H*W) -> (N, Cout, H, W): tiny wrapper reshape/transpose on 16 KiB.
    return jnp.transpose(out_flat.reshape(Cout, N, H, W), (1, 0, 2, 3))


def reference_forward(x_nchw, w_oihw, b_conv, gamma, beta, *, padding=1, eps=1e-5):
    """Pure-JAX reference (NCHW), matching PyTorch ConvBlock in training mode."""
    y = jax.lax.conv_general_dilated(
        x_nchw, w_oihw, window_strides=(1, 1),
        padding=((padding, padding), (padding, padding)),
        dimension_numbers=('NCHW', 'OIHW', 'NCHW'))
    y = y + b_conv.reshape(1, -1, 1, 1)
    mean = jnp.mean(y, axis=(0, 2, 3), keepdims=True)
    var = jnp.mean((y - mean) ** 2, axis=(0, 2, 3), keepdims=True)
    y = (y - mean) * jax.lax.rsqrt(var + eps)
    y = y * gamma.reshape(1, -1, 1, 1) + beta.reshape(1, -1, 1, 1)
    return jnp.maximum(y, 0.0)


if __name__ == "__main__":
    # batch=2, in_channels=4, out_channels=8, spatial=16x16, kernel=3, stride=1, pad=1.
    N, Cin, Cout, H, W, Ksz = 2, 4, 8, 16, 16, 3

    key = jax.random.PRNGKey(0)
    k_x, k_w, k_b, k_g, k_be = jax.random.split(key, 5)

    x = jax.random.normal(k_x, (N, Cin, H, W), dtype=jnp.float32)
    w = jax.random.normal(k_w, (Cout, Cin, Ksz, Ksz), dtype=jnp.float32) * 0.1
    b = jax.random.normal(k_b, (Cout,), dtype=jnp.float32) * 0.1
    gamma = 1.0 + 0.1 * jax.random.normal(k_g, (Cout,), dtype=jnp.float32)
    beta = 0.1 * jax.random.normal(k_be, (Cout,), dtype=jnp.float32)

    out = conv_block_forward(x, w, b, gamma, beta)
    out = jax.block_until_ready(out)

    ref = reference_forward(x, w, b, gamma, beta)
    assert out.shape == (N, Cout, H, W)
    assert jnp.allclose(out, ref, atol=2e-2, rtol=2e-2), "mismatch vs JAX reference"

    print("KERNEL_OK")
</pallas_src>

<mosaic_0001>
module attributes {stable_mosaic.version = 11 : i64} {
  func.func @fused_convbn_kernel(%arg0: i32, %arg1: memref<8x36xbf16, #tpu.memory_space<vmem>>, %arg2: memref<36x512xbf16, #tpu.memory_space<vmem>>, %arg3: memref<8x1xf32, #tpu.memory_space<vmem>>, %arg4: memref<8x1xf32, #tpu.memory_space<vmem>>, %arg5: memref<8x512xf32, #tpu.memory_space<vmem>>) attributes {dimension_semantics = [#tpu.dimension_semantics<arbitrary>], iteration_bounds = array<i64: 1>, scalar_prefetch = 0 : i64, scratch_operands = 0 : i64, tpu.core_type = #tpu.core_type<tc>, window_params = [{pipeline_mode = #tpu.pipeline_mode<synchronous>, transform_indices = @transform_0, window_bounds = array<i64: 8, 36>}, {pipeline_mode = #tpu.pipeline_mode<synchronous>, transform_indices = @transform_1, window_bounds = array<i64: 36, 512>}, {pipeline_mode = #tpu.pipeline_mode<synchronous>, transform_indices = @transform_2, window_bounds = array<i64: 8, 1>}, {pipeline_mode = #tpu.pipeline_mode<synchronous>, transform_indices = @transform_3, window_bounds = array<i64: 8, 1>}, {pipeline_mode = #tpu.pipeline_mode<synchronous>, transform_indices = @transform_4, window_bounds = array<i64: 8, 512>}]} {
    %c0 = arith.constant 0 : index
    %c0_0 = arith.constant 0 : index
    %0 = vector.load %arg1[%c0, %c0_0] : memref<8x36xbf16, #tpu.memory_space<vmem>>, vector<8x36xbf16>
    %c0_1 = arith.constant 0 : index
    %c0_2 = arith.constant 0 : index
    %1 = vector.load %arg2[%c0_1, %c0_2] : memref<36x512xbf16, #tpu.memory_space<vmem>>, vector<36x512xbf16>
    %cst = arith.constant dense<0.000000e+00> : vector<8x512xf32>
    %2 = tpu.matmul %0, %1, %cst {dimension_numbers = #tpu.dot_dimension_numbers<[1], [0], [0], [1], [0, 0, 1, 1], [], []>} : vector<8x36xbf16>, vector<36x512xbf16>, vector<8x512xf32> -> vector<8x512xf32>
    %cst_3 = arith.constant dense<0.000000e+00> : vector<8xf32>
    %3 = vector.multi_reduction <add>, %2, %cst_3 [1] : vector<8x512xf32> to vector<8xf32>
    %4 = vector.shape_cast %3 : vector<8xf32> to vector<8x1xf32>
    %cst_4 = arith.constant 0.001953125 : f32
    %5 = vector.broadcast %cst_4 : f32 to vector<8x1xf32>
    %6 = arith.mulf %4, %5 : vector<8x1xf32>
    %7 = vector.broadcast %6 : vector<8x1xf32> to vector<8x512xf32>
    %8 = arith.subf %2, %7 : vector<8x512xf32>
    %9 = arith.mulf %8, %8 : vector<8x512xf32>
    %cst_5 = arith.constant dense<0.000000e+00> : vector<8xf32>
    %10 = vector.multi_reduction <add>, %9, %cst_5 [1] : vector<8x512xf32> to vector<8xf32>
    %11 = vector.shape_cast %10 : vector<8xf32> to vector<8x1xf32>
    %cst_6 = arith.constant 0.001953125 : f32
    %12 = vector.broadcast %cst_6 : f32 to vector<8x1xf32>
    %13 = arith.mulf %11, %12 : vector<8x1xf32>
    %cst_7 = arith.constant 9.99999974E-6 : f32
    %14 = vector.broadcast %cst_7 : f32 to vector<8x1xf32>
    %15 = arith.addf %13, %14 : vector<8x1xf32>
    %16 = math.rsqrt %15 : vector<8x1xf32>
    %c0_8 = arith.constant 0 : index
    %c0_9 = arith.constant 0 : index
    %17 = vector.load %arg3[%c0_8, %c0_9] : memref<8x1xf32, #tpu.memory_space<vmem>>, vector<8x1xf32>
    %18 = arith.mulf %17, %16 : vector<8x1xf32>
    %c0_10 = arith.constant 0 : index
    %c0_11 = arith.constant 0 : index
    %19 = vector.load %arg4[%c0_10, %c0_11] : memref<8x1xf32, #tpu.memory_space<vmem>>, vector<8x1xf32>
    %20 = arith.mulf %6, %18 : vector<8x1xf32>
    %21 = arith.subf %19, %20 : vector<8x1xf32>
    %22 = vector.broadcast %18 : vector<8x1xf32> to vector<8x512xf32>
    %23 = arith.mulf %2, %22 : vector<8x512xf32>
    %24 = vector.broadcast %21 : vector<8x1xf32> to vector<8x512xf32>
    %25 = arith.addf %23, %24 : vector<8x512xf32>
    %cst_12 = arith.constant 0.000000e+00 : f32
    %26 = vector.broadcast %cst_12 : f32 to vector<8x512xf32>
    %27 = arith.maximumf %25, %26 : vector<8x512xf32>
    %c0_13 = arith.constant 0 : index
    %c0_14 = arith.constant 0 : index
    %28 = vector.load %arg5[%c0_13, %c0_14] : memref<8x512xf32, #tpu.memory_space<vmem>>, vector<8x512xf32>
    tpu.vector_store %arg5[%c0_13, %c0_14], %27 {strides = array<i32>} : memref<8x512xf32, #tpu.memory_space<vmem>>, vector<8x512xf32>,
    return
  }
  func.func @transform_0(%arg0: i32) -> (i32, i32) {
    %c0_i32 = arith.constant 0 : i32
    %c0_i32_0 = arith.constant 0 : i32
    %c0_i32_1 = arith.constant 0 : i32
    return %c0_i32, %c0_i32_0 : i32, i32
  }
  func.func @transform_1(%arg0: i32) -> (i32, i32) {
    %c0_i32 = arith.constant 0 : i32
    %c0_i32_0 = arith.constant 0 : i32
    %c0_i32_1 = arith.constant 0 : i32
    return %c0_i32, %c0_i32_0 : i32, i32
  }
  func.func @transform_2(%arg0: i32) -> (i32, i32) {
    %c0_i32 = arith.constant 0 : i32
    %c0_i32_0 = arith.constant 0 : i32
    %c0_i32_1 = arith.constant 0 : i32
    return %c0_i32, %c0_i32_0 : i32, i32
  }
  func.func @transform_3(%arg0: i32) -> (i32, i32) {
    %c0_i32 = arith.constant 0 : i32
    %c0_i32_0 = arith.constant 0 : i32
    %c0_i32_1 = arith.constant 0 : i32
    return %c0_i32, %c0_i32_0 : i32, i32
  }
  func.func @transform_4(%arg0: i32) -> (i32, i32) {
    %c0_i32 = arith.constant 0 : i32
    %c0_i32_0 = arith.constant 0 : i32
    %c0_i32_1 = arith.constant 0 : i32
    return %c0_i32, %c0_i32_0 : i32, i32
  }
}

</mosaic_0001>

<bundles_post_ra>
// kernel: tpu_custom_call.1
= control target key start
LH: loop header
LB: loop body
LE: loop exit
PB: predicated region body
PF: predicated region fallthrough
CT: control target
= control target key end

     0   :  { %9 = vsyncpa [#allocation3], 0  ;;  %s413_s0 = inlined_call_operand.vmem [shape: bf16[8,36], index: 0, kind: input, shape index: {}]   ;;  %s414_s1 = inlined_call_operand.hbm [shape: bf16[36,512], index: 1, kind: input, shape index: {}]   ;;  %s415_s2 = inlined_call_operand.vmem [shape: f32[8,1], index: 2, kind: input, shape index: {}]   ;;  %s416_s3 = inlined_call_operand.vmem [shape: f32[8,1], index: 3, kind: input, shape index: {}]   ;;  %s417_s4 = inlined_call_operand.hbm [shape: f32[8,512], index: 4, kind: output, shape index: {}]  }
   0x1   :  { %10 = vsyncpa [#allocation4], 0  ;;  %s350_s15 = smov [#allocation2]   ;;  %s302_s19 = scalar_lea.hbm %s414_s1, 1280 }
   0x2   :  { %s18_s16 = sshll.u32 %s350_s15, 4  ;;  %p303_p0 = scmp.ne.s32.totalorder %s414_s1, %s302_s19  ;;  %s19_s16 = int_to_ptr.vmem [resolvable:$true] %s18_s16 }
   0x3   :  { %p306_p1 = scmp.lt.u32.totalorder %s302_s19, %s414_s1 }
   0x5   :  { %p308_p2 = pnand %p306_p1, %p303_p0 }
   0x7   :  { %311 = shalt.err (!%p308_p2)
}
   0x8   :  { %s312_s24 = scalar_lea.vmem %s19_s16, 1280  ;;  %p317_p4 = scmp.lt.s32.totalorder %s19_s16, %s19_s16 }
   0x9   :  { %p313_p3 = scmp.ne.s32.totalorder %s19_s16, %s312_s24  ;;  %p318_p5 = scmp.lt.s32.totalorder %s312_s24, %s312_s24 }
   0xb   :  { %p319_p6 = por %p318_p5, %p317_p4 }
   0xd   :  { %p320_p7 = pnand %p319_p6, %p313_p3 }
   0xf   :  { %323 = shalt.err (!%p320_p7)
}
  0x10   :  { %s351_s25 = smov 256   ;;  %s352_s26 = smov 16  }
  0x11   :  { %24 = dma.hbm_to_vmem [thread:$0]  %s414_s1, 1280, %s19_s16, [#allocation3], %s351_s25, %s351_s25, %s352_s26  }
  0x12   :  { %346 = dma.done.wait [#allocation3], 1280  }
  0x13   :  { %347 = vsyncadd [#allocation3], 4294966016  ;;  %v353_v0 = vmov 0   ;;  %v284_v1 = vld [vmem:[#allocation2 + $0x4] ss:$16 sps:$4 sm:$0xff]   ;;  %vm98_vm0 = vcmask 1041408  }
  0x14   :  { %143 = vmatprep.mubr.bf16.mxu0 %v353_v0  ;;  %184 = vmatprep.mubr.bf16.mxu1 %v353_v0  ;;  %v286_v2 = vld [vmem:[#allocation2 + $0xc] ss:$16 sps:$4 sm:$0xff]   ;;  %v288_v3 = vld [vmem:[#allocation2] ss:$16 sps:$4 sm:$0xff]   ;;  %v289_v4 = vld [vmem:[#allocation2 + $0x8] ss:$16 sps:$4 sm:$0xff]  }
  0x15   :  { %282 = vset.pattern.permute.xlu1 %v353_v0  ;;  %283 = vset.pattern.permute.xlu0 %v353_v0  ;;  %v290_v5 = vld [vmem:[#allocation2 + $0x24] ss:$16 sps:$4 sm:$0xff]   ;;  %v292_v6 = vld [vmem:[#allocation2 + $0x2c] ss:$16 sps:$4 sm:$0xff]   ;;  %v294_v7 = vld [vmem:[#allocation2 + $0x20] ss:$16 sps:$4 sm:$0xff]  }
  0x16   :  { %111 = vmatprep.subr.bf16.mxu0 %v284_v1  ;;  %152 = vmatprep.subr.bf16.mxu1 %v286_v2  ;;  %v295_v8 = vld [vmem:[#allocation2 + $0x28] ss:$16 sps:$4 sm:$0xff]   ;;  %v42_v9 = vld [vmem:[#allocation2 + $0x40] sm:$0x33]  ;;  %vm94_vm1 = vcmask 293888   ;;  %s354_s7 = smov [#allocation5]  }
  0x17   :  { %112 = vmatpush1.bf16.msra.mxu0 %v288_v3  ;;  %153 = vmatpush1.bf16.msra.mxu1 %v289_v4  ;;  %v43_v10 = vld [vmem:[#allocation2 + $0x48] sm:$0x33]  ;;  %v270_v11 = vcombine.high %v42_v9, %v42_v9  ;;  %v269_v13 = vcombine.low %v42_v9, %v42_v9  ;;  %v33_v17 = vld [vmem:[%s413_s0] sm:$0xf]  ;;  %s252_s8 = sshll.u32 %s354_s7, 4  ;;  %s253_s8 = int_to_ptr.vmem [resolvable:$true] %s252_s8 }
  0x18   :  { %113 = vmatprep.subr.bf16.mxu0 %v290_v5  ;;  %154 = vmatprep.subr.bf16.mxu1 %v292_v6  ;;  %v272_v12 = vcombine.high %v43_v10, %v43_v10  ;;  %v271_v14 = vcombine.low %v43_v10, %v43_v10  ;;  %v215_v45 = vld [vmem:[%s415_s2] sm:$0xff]  ;;  %s324_s2 = scalar_lea.vmem %s253_s8, 512  ;;  %p329_p9 = scmp.lt.s32.totalorder %s253_s8, %s253_s8 }
  0x19   :  { %v100_v15 = vsel %vm98_vm0, %v269_v13, 0  ;;  %v217_v48 = vld [vmem:[%s416_s3] sm:$0xff]  ;;  %p325_p8 = scmp.ne.s32.totalorder %s253_s8, %s324_s2  ;;  %p330_p10 = scmp.lt.s32.totalorder %s324_s2, %s324_s2 }
  0x1a   :  { %v106_v16 = vsel %vm98_vm0, %v271_v14, 0 }
  0x1b   :  { %114 = vmatpush1.bf16.msra.mxu0 %v294_v7  ;;  %155 = vmatpush1.bf16.msra.mxu1 %v295_v8  ;;  %p331_p11 = por %p330_p10, %p329_p9 }
  0x1c   :  { %273 = vmatprep.subr.msk.bf16.mxu0 %vm98_vm0, %v270_v11  ;;  %275 = vmatprep.subr.msk.bf16.mxu1 %vm98_vm0, %v272_v12 }
  0x1d   :  { %p332_p12 = pnand %p331_p11, %p325_p8 }
  0x1f   :  { %116 = vmatpush1.bf16.msra.mxu0 %v100_v15  ;;  %157 = vmatpush1.bf16.msra.mxu1 %v106_v16 }
  0x22   :  { %274 = vmatmul.mubr.msk.bf16.vlgmr.msra.gmra.mrb[0].mxu0 %vm94_vm1, %v33_v17  ;;  %276 = vmatmul.mubr.msk.bf16.vlgmr.msra.gmra.mrb[0].mxu1 %vm94_vm1, %v33_v17 }
  0xf5   :  { %v145_v18 = vpop.f32.mrb[0].mxu0  ;;  %v186_v19 = vpop.f32.mrb[0].mxu1 }
  0xf6   :  { %v147_v20 = vpop.f32.mrb[1].mxu0  ;;  %v188_v21 = vpop.f32.mrb[1].mxu1 }
  0xf7   :  { %v193_v22 = vadd.f32 %v147_v20, %v145_v18  ;;  %v149_v23 = vpop.f32.mrb[2].mxu0  ;;  %v190_v24 = vpop.f32.mrb[2].mxu1 }
  0xf8   :  { %v150_v25 = vpop.f32.mrb[3].mxu0  ;;  %v191_v26 = vpop.f32.mrb[3].mxu1 }
  0xf9   :  { %v194_v27 = vadd.f32 %v193_v22, %v186_v19 }
  0xfb   :  { %v195_v28 = vadd.f32 %v194_v27, %v188_v21 }
  0xfd   :  { %196 = vadd.xlane.f32.xlu0 %v195_v28 }
 0x18a   :  { %v197_v29 = vpop.xlane.xlu0 %196 }
 0x18b   :  { %v198_v30 = vmul.f32 0.001953125, %v197_v29 }
 0x18d   :  { %v199_v31 = vsub.f32 %v145_v18, %v198_v30  ;;  %v200_v32 = vsub.f32 %v147_v20, %v198_v30  ;;  %v201_v33 = vsub.f32 %v186_v19, %v198_v30  ;;  %v202_v34 = vsub.f32 %v188_v21, %v198_v30 }
 0x18f   :  { %v203_v35 = vmul.f32 %v199_v31, %v199_v31  ;;  %v204_v36 = vmul.f32 %v200_v32, %v200_v32  ;;  %v205_v37 = vmul.f32 %v201_v33, %v201_v33  ;;  %v206_v39 = vmul.f32 %v202_v34, %v202_v34 }
 0x191   :  { %v207_v38 = vadd.f32 %v204_v36, %v203_v35 }
 0x193   :  { %v208_v40 = vadd.f32 %v207_v38, %v205_v37 }
 0x195   :  { %v209_v41 = vadd.f32 %v208_v40, %v206_v39 }
 0x197   :  { %210 = vadd.xlane.f32.xlu0 %v209_v41 }
 0x224   :  { %v211_v42 = vpop.xlane.xlu0 %210 }
 0x225   :  { %v212_v43 = vmul.f32 0.001953125, %v211_v42 }
 0x227   :  { %v213_v44 = vadd.f32 1e-05, %v212_v43 }
 0x229   :  { %300 = vrsqrt.f32 %v213_v44 }
 0x233   :  { %v301_v46 = vpop.eup %300 }
 0x234   :  { %v216_v47 = vmul.f32 %v301_v46, %v215_v45 }
 0x236   :  { %222 = vperm.xlu1 %282, %v216_v47   ;;  %v218_v49 = vmul.f32 %v216_v47, %v198_v30 }
 0x238   :  { %v219_v50 = vsub.f32 %v217_v48, %v218_v49 }
 0x23a   :  { %231 = vperm.xlu1 %282, %v219_v50  }
 0x2b5   :  { %v223_v51 = vpop.permute.xlu1 %222 }
 0x2b6   :  { %v225_v52 = vmul.f32 %v223_v51, %v145_v18  ;;  %v226_v53 = vmul.f32 %v223_v51, %v147_v20  ;;  %v227_v54 = vmul.f32 %v223_v51, %v186_v19  ;;  %v228_v55 = vmul.f32 %v223_v51, %v188_v21 }
 0x2b9   :  { %v232_v56 = vpop.permute.xlu1 %231 }
 0x2ba   :  { %v234_v57 = vadd.f32 %v232_v56, %v225_v52  ;;  %v235_v58 = vadd.f32 %v232_v56, %v226_v53  ;;  %v236_v59 = vadd.f32 %v232_v56, %v227_v54  ;;  %v237_v60 = vadd.f32 %v232_v56, %v228_v55 }
 0x2bc   :  { %v238_v61 = vmax.f32 %v234_v57, 0.0  ;;  %v239_v62 = vmax.f32 %v235_v58, 0.0  ;;  %v240_v63 = vmax.f32 %v236_v59, 0.0  ;;  %v241_v0 = vmax.f32 %v237_v60, 0.0 }
 0x2be   :  { %242 = vst [vmem:[#allocation5] sm:$0xff] %v238_v61  ;;  %243 = vst [vmem:[#allocation5 + $0x8] sm:$0xff] %v239_v62 }
 0x2bf   :  { %244 = vst [vmem:[#allocation5 + $0x10] sm:$0xff] %v240_v63  ;;  %245 = vst [vmem:[#allocation5 + $0x18] sm:$0xff] %v241_v0 }
 0x2c0   :  { %335 = shalt.err (!%p332_p12)
}
 0x2c1   :  { %s336_s10 = scalar_lea.hbm %s417_s4, 512 }
 0x2c2   :  { %p337_p13 = scmp.ne.s32.totalorder %s417_s4, %s336_s10  ;;  %p340_p0 = scmp.lt.u32.totalorder %s336_s10, %s417_s4 }
 0x2c4   :  { %p342_p1 = pnand %p340_p0, %p337_p13 }
 0x2c6   :  { %345 = shalt.err (!%p342_p1)
}
 0x2c7   :  { %255 = dma.vmem_to_hbm [thread:$0]  %s253_s8, 512, %s417_s4, [#allocation4]  }
 0x2c8   :  { %348 = dma.done.wait [#allocation4], 512  }
 0x2c9   :  { %349 = vsyncadd [#allocation4], 4294966784 }
 0x2ca   :  { %259 = vsyncpa [#allocation3], 1 }
 0x2cb   :  { %260 = vsyncpa [#allocation4], 1 }

</bundles_post_ra>
